<compile_context>
chip_gen: v7x
topology: tpu7x:2x2x1
jax: 0.10.0
libtpu: 0.0.40
codegen_flags: <defaults>
</compile_context>

<pallas_src>
import functools

import jax
import jax.numpy as jnp
from jax import lax
from jax.experimental import pallas as pl
from jax.experimental.pallas import tpu as pltpu


def _groupnorm_kernel(x_ref, gamma_ref, beta_ref, o_ref, *, eps):
    # x block: (1, C, H, TW); gamma/beta blocks: (1, C, 1, 1) already f32.
    x = x_ref[...].astype(jnp.float32)

    # Per-(n, w) statistics over (C, H) == torch mean/var over dims (1, 2, 3)
    # of the (N, G, C//G, H, W) view, with unbiased=False.
    mean = jnp.mean(x, axis=(1, 2), keepdims=True)        # (1, 1, 1, TW)
    xm = x - mean                                          # reused below
    var = jnp.mean(xm * xm, axis=(1, 2), keepdims=True)    # population var

    inv = lax.rsqrt(var + eps)                             # EUP rsqrt (no divide)
    scale = gamma_ref[...] * inv                           # small (1, C, 1, TW)
    y = xm * scale + beta_ref[...]                         # single full-tile FMA
    o_ref[...] = y.astype(o_ref.dtype)


def _pick_tile_w(C, H, W, itemsize, block_budget_bytes):
    """Largest lane-dense (multiple-of-128) W tile that divides W and fits budget."""
    if W % 128 != 0:
        # Small or odd W: the block must cover the full width (lane rule:
        # block dim must be a multiple of 128 or equal the full extent).
        return W
    bytes_per_col = C * H * itemsize
    for tw in (1024, 512, 256, 128):
        if W % tw == 0 and tw * bytes_per_col <= block_budget_bytes:
            return tw
    # Even a 128-wide tile exceeds the budget (very large C*H): take the
    # smallest lane-dense tile and rely on the raised VMEM limit.
    return 128


def group_norm(x, gamma, beta, *, num_groups=4, eps=1e-5,
               block_budget_bytes=6 * 1024 * 1024):
    N, C, H, W = x.shape
    assert C % num_groups == 0
    assert gamma.shape == (1, C, 1, 1) and beta.shape == (1, C, 1, 1)

    gamma32 = gamma.astype(jnp.float32)
    beta32 = beta.astype(jnp.float32)

    itemsize = jnp.dtype(x.dtype).itemsize
    tw = _pick_tile_w(C, H, W, itemsize, block_budget_bytes)
    n_w = pl.cdiv(W, tw)

    kernel = functools.partial(_groupnorm_kernel, eps=float(eps))

    total = N * C * H * W
    cost = pl.CostEstimate(
        flops=9 * total,
        transcendentals=N * W,
        bytes_accessed=2 * total * itemsize + 2 * C * 4,
    )

    return pl.pallas_call(
        kernel,
        out_shape=jax.ShapeDtypeStruct((N, C, H, W), x.dtype),
        grid_spec=pltpu.PrefetchScalarGridSpec(
            num_scalar_prefetch=0,
            grid=(N, n_w),
            in_specs=[
                pl.BlockSpec((1, C, H, tw), lambda n, w: (n, 0, 0, w)),
                pl.BlockSpec((1, C, 1, 1), lambda n, w: (0, 0, 0, 0)),
                pl.BlockSpec((1, C, 1, 1), lambda n, w: (0, 0, 0, 0)),
            ],
            out_specs=pl.BlockSpec((1, C, H, tw), lambda n, w: (n, 0, 0, w)),
        ),
        compiler_params=pltpu.CompilerParams(
            dimension_semantics=("parallel", "parallel"),
            vmem_limit_bytes=32 * 1024 * 1024,
        ),
        cost_estimate=cost,
    )(x, gamma32, beta32)


def group_norm_ref(x, gamma, beta, *, num_groups=4, eps=1e-5):
    # Pure-JAX reference mirroring the PyTorch forward exactly.
    N, C, H, W = x.shape
    xr = x.reshape(N, num_groups, C // num_groups, H, W)
    mean = jnp.mean(xr, axis=(1, 2, 3), keepdims=True)
    var = jnp.mean((xr - mean) ** 2, axis=(1, 2, 3), keepdims=True)
    xn = (xr - mean) / jnp.sqrt(var + eps)
    xn = xn.reshape(N, C, H, W)
    return xn * gamma + beta


if __name__ == "__main__":
    # Module-implied shapes: NCHW input, num_features == C, num_groups == 4.
    N, C, H, W = 2, 4, 16, 16
    num_groups = 4
    eps = 1e-5

    key = jax.random.PRNGKey(0)
    x = jax.random.normal(key, (N, C, H, W), dtype=jnp.float32)

    # Deterministic parameter init exactly like the module: gamma=1, beta=0.
    gamma = jnp.ones((1, C, 1, 1), dtype=jnp.float32)
    beta = jnp.zeros((1, C, 1, 1), dtype=jnp.float32)

    y = group_norm(x, gamma, beta, num_groups=num_groups, eps=eps)
    y = jax.block_until_ready(y)

    y_ref = group_norm_ref(x, gamma, beta, num_groups=num_groups, eps=eps)
    assert y.shape == (N, C, H, W)
    assert jnp.allclose(y, y_ref, atol=1e-5, rtol=1e-5), "mismatch vs reference"

    print("KERNEL_OK")
</pallas_src>

<mosaic_0001>
module attributes {stable_mosaic.version = 11 : i64} {
  func.func @_groupnorm_kernel(%arg0: i32, %arg1: i32, %arg2: memref<1x4x16x16xf32, #tpu.memory_space<vmem>>, %arg3: memref<1x4x1x1xf32, #tpu.memory_space<vmem>>, %arg4: memref<1x4x1x1xf32, #tpu.memory_space<vmem>>, %arg5: memref<1x4x16x16xf32, #tpu.memory_space<vmem>>) attributes {dimension_semantics = [#tpu.dimension_semantics<parallel>, #tpu.dimension_semantics<parallel>], iteration_bounds = array<i64: 2, 1>, scalar_prefetch = 0 : i64, scratch_operands = 0 : i64, tpu.core_type = #tpu.core_type<tc>, window_params = [{transform_indices = @transform_0, window_bounds = array<i64: 1, 4, 16, 16>}, {pipeline_mode = #tpu.pipeline_mode<synchronous>, transform_indices = @transform_1, window_bounds = array<i64: 1, 4, 1, 1>}, {pipeline_mode = #tpu.pipeline_mode<synchronous>, transform_indices = @transform_2, window_bounds = array<i64: 1, 4, 1, 1>}, {transform_indices = @transform_3, window_bounds = array<i64: 1, 4, 16, 16>}]} {
    %c0 = arith.constant 0 : index
    %c0_0 = arith.constant 0 : index
    %c0_1 = arith.constant 0 : index
    %c0_2 = arith.constant 0 : index
    %0 = vector.load %arg2[%c0, %c0_0, %c0_1, %c0_2] : memref<1x4x16x16xf32, #tpu.memory_space<vmem>>, vector<1x4x16x16xf32>
    %cst = arith.constant dense<0.000000e+00> : vector<1x16xf32>
    %1 = vector.multi_reduction <add>, %0, %cst [1, 2] : vector<1x4x16x16xf32> to vector<1x16xf32>
    %2 = vector.shape_cast %1 : vector<1x16xf32> to vector<1x1x1x16xf32>
    %cst_3 = arith.constant 6.400000e+01 : f32
    %3 = vector.broadcast %cst_3 : f32 to vector<1x1x1x16xf32>
    %4 = arith.divf %2, %3 : vector<1x1x1x16xf32>
    %5 = vector.broadcast %4 : vector<1x1x1x16xf32> to vector<1x4x16x16xf32>
    %6 = arith.subf %0, %5 : vector<1x4x16x16xf32>
    %7 = arith.mulf %6, %6 : vector<1x4x16x16xf32>
    %cst_4 = arith.constant dense<0.000000e+00> : vector<1x16xf32>
    %8 = vector.multi_reduction <add>, %7, %cst_4 [1, 2] : vector<1x4x16x16xf32> to vector<1x16xf32>
    %9 = vector.shape_cast %8 : vector<1x16xf32> to vector<1x1x1x16xf32>
    %cst_5 = arith.constant 6.400000e+01 : f32
    %10 = vector.broadcast %cst_5 : f32 to vector<1x1x1x16xf32>
    %11 = arith.divf %9, %10 : vector<1x1x1x16xf32>
    %cst_6 = arith.constant 9.99999974E-6 : f32
    %12 = vector.broadcast %cst_6 : f32 to vector<1x1x1x16xf32>
    %13 = arith.addf %11, %12 : vector<1x1x1x16xf32>
    %14 = math.rsqrt %13 : vector<1x1x1x16xf32>
    %c0_7 = arith.constant 0 : index
    %c0_8 = arith.constant 0 : index
    %c0_9 = arith.constant 0 : index
    %c0_10 = arith.constant 0 : index
    %15 = vector.load %arg3[%c0_7, %c0_8, %c0_9, %c0_10] : memref<1x4x1x1xf32, #tpu.memory_space<vmem>>, vector<1x4x1x1xf32>
    %16 = vector.broadcast %15 : vector<1x4x1x1xf32> to vector<1x4x1x16xf32>
    %17 = vector.broadcast %14 : vector<1x1x1x16xf32> to vector<1x4x1x16xf32>
    %18 = arith.mulf %16, %17 : vector<1x4x1x16xf32>
    %19 = vector.broadcast %18 : vector<1x4x1x16xf32> to vector<1x4x16x16xf32>
    %20 = arith.mulf %6, %19 : vector<1x4x16x16xf32>
    %c0_11 = arith.constant 0 : index
    %c0_12 = arith.constant 0 : index
    %c0_13 = arith.constant 0 : index
    %c0_14 = arith.constant 0 : index
    %21 = vector.load %arg4[%c0_11, %c0_12, %c0_13, %c0_14] : memref<1x4x1x1xf32, #tpu.memory_space<vmem>>, vector<1x4x1x1xf32>
    %22 = vector.broadcast %21 : vector<1x4x1x1xf32> to vector<1x4x16x16xf32>
    %23 = arith.addf %20, %22 : vector<1x4x16x16xf32>
    %c0_15 = arith.constant 0 : index
    %c0_16 = arith.constant 0 : index
    %c0_17 = arith.constant 0 : index
    %c0_18 = arith.constant 0 : index
    %24 = vector.load %arg5[%c0_15, %c0_16, %c0_17, %c0_18] : memref<1x4x16x16xf32, #tpu.memory_space<vmem>>, vector<1x4x16x16xf32>
    tpu.vector_store %arg5[%c0_15, %c0_16, %c0_17, %c0_18], %23 {strides = array<i32>} : memref<1x4x16x16xf32, #tpu.memory_space<vmem>>, vector<1x4x16x16xf32>,
    return
  }
  func.func @transform_0(%arg0: i32, %arg1: i32) -> (i32, i32, i32, i32) {
    %c0_i32 = arith.constant 0 : i32
    %c0_i32_0 = arith.constant 0 : i32
    %c0_i32_1 = arith.constant 0 : i32
    return %arg0, %c0_i32, %c0_i32_0, %arg1 : i32, i32, i32, i32
  }
  func.func @transform_1(%arg0: i32, %arg1: i32) -> (i32, i32, i32, i32) {
    %c0_i32 = arith.constant 0 : i32
    %c0_i32_0 = arith.constant 0 : i32
    %c0_i32_1 = arith.constant 0 : i32
    %c0_i32_2 = arith.constant 0 : i32
    %c0_i32_3 = arith.constant 0 : i32
    return %c0_i32, %c0_i32_0, %c0_i32_1, %c0_i32_2 : i32, i32, i32, i32
  }
  func.func @transform_2(%arg0: i32, %arg1: i32) -> (i32, i32, i32, i32) {
    %c0_i32 = arith.constant 0 : i32
    %c0_i32_0 = arith.constant 0 : i32
    %c0_i32_1 = arith.constant 0 : i32
    %c0_i32_2 = arith.constant 0 : i32
    %c0_i32_3 = arith.constant 0 : i32
    return %c0_i32, %c0_i32_0, %c0_i32_1, %c0_i32_2 : i32, i32, i32, i32
  }
  func.func @transform_3(%arg0: i32, %arg1: i32) -> (i32, i32, i32, i32) {
    %c0_i32 = arith.constant 0 : i32
    %c0_i32_0 = arith.constant 0 : i32
    %c0_i32_1 = arith.constant 0 : i32
    return %arg0, %c0_i32, %c0_i32_0, %arg1 : i32, i32, i32, i32
  }
}

</mosaic_0001>

<bundles_post_ra>
// kernel: tpu_custom_call.1
= control target key start
LH: loop header
LB: loop body
LE: loop exit
PB: predicated region body
PF: predicated region fallthrough
CT: control target
= control target key end

     0   :  { %8 = vsyncpa [#allocation3], 0  ;;  %s956_s0 = inlined_call_operand.hbm [shape: f32[2,4,16,16], index: 0, kind: input, shape index: {}]   ;;  %s957_s1 = inlined_call_operand.vmem [shape: f32[1,4,1,1], index: 1, kind: input, shape index: {}]   ;;  %s958_s2 = inlined_call_operand.vmem [shape: f32[1,4,1,1], index: 2, kind: input, shape index: {}]   ;;  %s959_s3 = inlined_call_operand.hbm [shape: f32[2,4,16,16], index: 3, kind: output, shape index: {}]  }
   0x1   :  { %10 = vsyncpa [#allocation3 + $0x1], 0 }
   0x2   :  { %11 = vsyncpa [#allocation4], 0 }
   0x3   :  { %13 = vsyncpa [#allocation4 + $0x1], 0  ;;  %s719_s12 = smov 0   ;;  %s721_s13 = smov 0  }
   0x4   :  { %s723_s14 = smov 0   ;;  %s725_s15 = smov 0  }
   0x5   :  { %s727_s16 = smov 0   ;;  %s729_s17 = smov 0  }
   0x6 LB: > { %s486_s18 = sadd.s32 4294967295, %s690_s17   ;;  %s487_s19 = sadd.s32 4294967294, %s690_s17   ;;  %s690_s17 = sphi %s729_s17, %s19_s17   ;;  %s686_s16 = sphi %s727_s16, %s974_s16   ;;  %s682_s15 = sphi %s725_s15, %s973_s15   ;;  %s678_s14 = sphi %s723_s14, %s972_s14   ;;  %s674_s13 = sphi %s721_s13, %s971_s13   ;;  %s670_s12 = sphi %s719_s12, %s970_s12  }
   0x7   : > { %s31_s20 = sadd.s32 1, %s686_s16  ;;  %s40_s21 = sadd.s32 1, %s678_s14 }
   0x8   : > { %p33_p0 = scmp.ge.s32.totalorder %s31_s20, 2  ;;  %p47_p1 = scmp.ne.s32.totalorder %s678_s14, %s674_s13 }
   0x9   : > { %p48_p2 = scmp.eq.s32.totalorder %s690_s17, 0  ;;  %p53_p3 = scmp.ne.s32.totalorder %s674_s13, %s670_s12 }
   0xa   : > { %s976_s20 = smov (%p33_p0, %s31_s20), 0  ;;  %p54_p5 = scmp.eq.s32.totalorder %s486_s18, 0 }
   0xb   : > { %p760_p4 = por %p48_p2, %p47_p1  ;;  %s35_s23 = ssub.s32 %s686_s16, %s976_s20 }
   0xc   : > { %p121_p6 = scmp.eq.s32.totalorder %s486_s18, 1  ;;  %p38_p7 = scmp.eq.s32.totalorder %s35_s23, 0 }
   0xd   : > { %p766_p8 = por %p54_p5, %p53_p3  ;;  %p127_p10 = scmp.eq.s32.totalorder %s487_s19, 1 }
   0xe   : > { %p770_p9 = por %p121_p6, %p47_p1  ;;  %p519_p13 = scmp.lt.s32.totalorder %s690_s17, 2 }
   0xf   : > { %s775_s26 = scalar_select %p38_p7, %s678_s14, %s40_s21  }
  0x10   : > { %s963_s25 = scalar_select %p770_p9, 1, 0 }
  0x11   : > { %p777_p11 = por %p127_p10, %p53_p3  ;;  %s153_s28 = sand.u32 1, %s678_s14  }
  0x12   : > { %s490_s29 = sshll.u32 %s153_s28, 6  ;;  %s505_s30 = sshll.u32 %s686_s16, 10 }
  0x13   : > { %s964_s27 = scalar_select %p777_p11, 1, 0 }
  0x14   : > { %s788_s6 = scalar_lea.hbm %s956_s0, %s505_s30  ;;  %s157_s7 = scalar_lea.vmem [#allocation2], %s490_s29 }
  0x15   : > { %s165_s8 = sshll.u32 %s157_s7, 4  ;;  %p794_p0 = pnand %p519_p13, %p760_p4  ;;  %s790_s8 = int_to_ptr.vmem [resolvable:$true] %s165_s8 }
  0x16   : > { %s799_s10 = scalar_lea.sflag [#allocation3], %s153_s28  ;;  %s578_s11 = scalar_lea.hbm %s788_s6, 1024 }
  0x17   : > { %p579_p2 = scmp.ne.s32.totalorder %s788_s6, %s578_s11  ;;  %p580_p3 = pneg %p794_p0 }
  0x18   : > { %s583_s21 = scalar_lea.hbm %s956_s0, 2048  ;;  %p584_p4 = scmp.lt.u32.totalorder %s788_s6, %s956_s0 }
  0x19   : > { %p581_p5 = pnand %p580_p3, %p579_p2  ;;  %p585_p7 = scmp.lt.u32.totalorder %s583_s21, %s578_s11 }
  0x1a   : > { %p587_p13 = scmp.lt.u32.totalorder %s578_s11, %s788_s6 }
  0x1b   : > { %p582_p6 = pneg %p581_p5  ;;  %p586_p10 = por %p585_p7, %p584_p4 }
  0x1d   : > { %p588_p12 = por %p587_p13, %p586_p10 }
  0x1f   : > { %p589_p1 = pnand %p588_p12, %p582_p6 }
  0x21   : > { %592 = shalt.err (!%p589_p1)
}
  0x22   : > { %s593_s28 = scalar_lea.vmem %s790_s8, 1024  ;;  %s692_s29 = smov [#allocation2]  }
  0x23   : > { %p594_p2 = scmp.ne.s32.totalorder %s790_s8, %s593_s28  ;;  %s598_s30 = sshll.u32 %s692_s29, 4  ;;  %s599_s30 = int_to_ptr.vmem [resolvable:$false] %s598_s30 }
  0x24   : > { %s600_s4 = scalar_lea.vmem %s599_s30, 2048  ;;  %p601_p9 = scmp.lt.s32.totalorder %s790_s8, %s599_s30 }
  0x25   : > { %p596_p5 = pnand %p594_p2, %p580_p3  ;;  %p602_p4 = scmp.lt.s32.totalorder %s600_s4, %s593_s28 }
  0x27   : > { %p597_p11 = pneg %p596_p5  ;;  %p603_p7 = por %p602_p4, %p601_p9 }
  0x29   : > { %p604_p10 = pnand %p603_p7, %p597_p11 }
  0x2b   : > { %607 = shalt.err (!%p604_p10)
}
  0x2c   : > { %s693_s5 = smov 128   ;;  %s694_s7 = smov 8  }
  0x2d   : > { %514 = dma.hbm_to_vmem [thread:$0]  (!%p794_p0), %s788_s6, 1024, %s790_s8, %s799_s10, %s693_s5, %s693_s5, %s694_s7  }
  0x2e   : > { %p173_p12 = scmp.lt.s32.totalorder %s690_s17, 3  ;;  %p966_p1 = scmp.ge.s32.totalorder %s690_s17, 1 }
  0x30   : > { %p174_p3 = pnand %p966_p1, %p173_p12 }
  0x31   : > { %s831_s11 = sand.u32 (!%p174_p3), 1, %s674_s13  }
  0x32   : > { %177 = sbr.rel (%p174_p3) target bundleno = 218 (0xda), region = 32  ;;  %s494_s18 = sshll.u32 (!%p174_p3), %s831_s11, 6 }
  0x33   : > { %s180_s19 = scalar_lea.sflag (!%p174_p3), [#allocation3], %s831_s11  ;;  %s837_s21 = scalar_lea.vmem (!%p174_p3), [#allocation2], %s494_s18 }
  0x39   : > { %661 = dma.done.wait (%p766_p8), %s180_s19, 1024  }
  0x3a   : > { %663 = vsyncadd (%p766_p8), %s180_s19, 4294966272  ;;  %v695_v0 = vmov 0   ;;  %v280_v1 = vld [vmem:[%s957_s1 + $0x2] sm:$0x1]  ;;  %v278_v2 = vld [vmem:[%s957_s1] sm:$0x1] }
  0x3b   : > { %575 = vset.pattern.permute.xlu1 %v695_v0  ;;  %574 = vset.pattern.permute.xlu0 %v695_v0  ;;  %vm214_vm0 = vcmask 130048   ;;  %v281_v3 = vld [vmem:[%s957_s1 + $0x3] sm:$0x1]  ;;  %v279_v4 = vld [vmem:[%s957_s1 + $0x1] sm:$0x1]  ;;  %v207_v6 = vld [vmem:[%s837_s21 + $0x8] sm:$0xff] }
  0x3c   : > { %302 = vperm.xlu1 %575, %v280_v1   ;;  %284 = vperm.xlu0 %574, %v278_v2   ;;  %v206_v5 = vld [vmem:[%s837_s21] sm:$0xff]  ;;  %v208_v7 = vld [vmem:[%s837_s21 + $0x10] sm:$0xff]  ;;  %v209_v8 = vld [vmem:[%s837_s21 + $0x18] sm:$0xff]  ;;  %v216_v10 = vsel %vm214_vm0, %v207_v6, 0.0  ;;  %s205_s9 = scalar_lea.vmem [#allocation5], %s494_s18  ;;  %s387_s18 = scalar_lea.sflag [#allocation4], %s831_s11 }
  0x3d   : > { %v215_v9 = vsel %vm214_vm0, %v206_v5, 0.0  ;;  %v218_v11 = vsel %vm214_vm0, %v208_v7, 0.0  ;;  %v210_v12 = vld [vmem:[%s837_s21 + $0x20] sm:$0xff]  ;;  %v220_v16 = vsel %vm214_vm0, %v209_v8, 0.0  ;;  %v211_v17 = vld [vmem:[%s837_s21 + $0x28] sm:$0xff]  ;;  %v212_v20 = vld [vmem:[%s837_s21 + $0x30] sm:$0xff] }
  0x3e   : > { %v217_v13 = vadd.f32 %v216_v10, %v215_v9  ;;  %v497_v14 = vld [vmem:[%s958_s2 + $0x1] ss:$0 sm:$0xff]  ;;  %v496_v15 = vld [vmem:[%s958_s2] ss:$0 sm:$0xff]  ;;  %v222_v19 = vsel %vm214_vm0, %v210_v12, 0.0  ;;  %v224_v24 = vsel %vm214_vm0, %v211_v17, 0.0 }
  0x3f   : > { %v499_v22 = vld [vmem:[%s958_s2 + $0x3] ss:$0 sm:$0xff]  ;;  %v498_v23 = vld [vmem:[%s958_s2 + $0x2] ss:$0 sm:$0xff]  ;;  %v213_v25 = vld [vmem:[%s837_s21 + $0x38] sm:$0xff]  ;;  %v226_v27 = vsel %vm214_vm0, %v212_v20, 0.0 }
  0x40   : > { %311 = vperm.xlu1 %575, %v281_v3   ;;  %293 = vperm.xlu0 %574, %v279_v4   ;;  %v219_v18 = vadd.f32 %v218_v11, %v217_v13  ;;  %v228_v29 = vsel %vm214_vm0, %v213_v25, 0.0  ;;  %s506_s21 = sshll.u32 %s682_s15, 10  ;;  %s401_s10 = sshll.u32 %s205_s9, 4  ;;  %s901_s10 = int_to_ptr.vmem [resolvable:$true] %s401_s10 }
  0x41   : > { %s899_s15 = scalar_lea.hbm %s959_s3, %s506_s21  ;;  %s608_s23 = scalar_lea.vmem %s901_s10, 1024 }
  0x42   : > { %v221_v21 = vadd.f32 %v220_v16, %v219_v18  ;;  %p609_p8 = scmp.ne.s32.totalorder %s901_s10, %s608_s23  ;;  %p967_p9 = scmp.ne.s32.totalorder %s963_s25, 0 }
  0x43   : > { %s696_s28 = smov [#allocation5]  }
  0x44   : > { %359 = vperm.xlu1 %575, %v497_v14   ;;  %355 = vperm.xlu0 %574, %v496_v15   ;;  %v223_v26 = vadd.f32 %v222_v19, %v221_v21  ;;  %v287_v14 = vlaneseq  ;;  %p610_p11 = pnand %p609_p8, %p967_p9  ;;  %s612_s29 = sshll.u32 %s696_s28, 4  ;;  %s613_s29 = int_to_ptr.vmem [resolvable:$false] %s612_s29 }
  0x45   : > { %s614_s30 = scalar_lea.vmem %s613_s29, 2048  ;;  %p615_p6 = scmp.lt.s32.totalorder %s901_s10, %s613_s29 }
  0x46   : > { %v225_v28 = vadd.f32 %v224_v24, %v223_v26  ;;  %v288_v15 = vshrl.u32 %v287_v14, 7  ;;  %p611_p0 = pneg %p610_p11  ;;  %p616_p13 = scmp.lt.s32.totalorder %s614_s30, %s608_s23 }
  0x48   : > { %367 = vperm.xlu1 %575, %v499_v22   ;;  %363 = vperm.xlu0 %574, %v498_v23   ;;  %v227_v30 = vadd.f32 %v226_v27, %v225_v28  ;;  %v289_v16 = vsub.s32 0, %v288_v15  ;;  %p617_p2 = por %p616_p13, %p615_p6 }
  0x4a   : > { %v229_v31 = vadd.f32 %v228_v29, %v227_v30  ;;  %p618_p5 = pnand %p617_p2, %p611_p0 }
  0x4c   : > { %v230_v32 = vrot.slane %v229_v31, 4 }
  0x4e   : > { %v231_v33 = vadd.f32 %v230_v32, %v229_v31 }
  0x50   : > { %v232_v34 = vrot.slane %v231_v33, 2 }
  0x52   : > { %v233_v35 = vadd.f32 %v232_v34, %v231_v33 }
  0x54   : > { %v234_v36 = vrot.slane %v233_v35, 1 }
  0x56   : > { %v235_v37 = vadd.f32 %v234_v36, %v233_v35 }
  0x58   : > { %v237_v38 = vmul.f32 0.015625, %v235_v37 }
  0x5a   : > { %v238_v39 = vsub.f32 %v206_v5, %v237_v38  ;;  %v239_v40 = vsub.f32 %v207_v6, %v237_v38  ;;  %v240_v41 = vsub.f32 %v208_v7, %v237_v38  ;;  %v241_v44 = vsub.f32 %v209_v8, %v237_v38 }
  0x5b   : > { %v242_v49 = vsub.f32 %v210_v12, %v237_v38  ;;  %v243_v53 = vsub.f32 %v211_v17, %v237_v38  ;;  %v244_v57 = vsub.f32 %v212_v20, %v237_v38  ;;  %v245_v61 = vsub.f32 %v213_v25, %v237_v38 }
  0x5c   : > { %v246_v42 = vmul.f32 %v238_v39, %v238_v39  ;;  %v247_v43 = vmul.f32 %v239_v40, %v239_v40  ;;  %v248_v45 = vmul.f32 %v240_v41, %v240_v41  ;;  %v249_v50 = vmul.f32 %v241_v44, %v241_v44 }
  0x5d   : > { %v250_v54 = vmul.f32 %v242_v49, %v242_v49  ;;  %v251_v58 = vmul.f32 %v243_v53, %v243_v53  ;;  %v252_v62 = vmul.f32 %v244_v57, %v244_v57  ;;  %v253_v1 = vmul.f32 %v245_v61, %v245_v61 }
  0x5e   : > { %v254_v46 = vsel %vm214_vm0, %v246_v42, 0.0  ;;  %v255_v47 = vsel %vm214_vm0, %v247_v43, 0.0  ;;  %v257_v51 = vsel %vm214_vm0, %v248_v45, 0.0  ;;  %v259_v55 = vsel %vm214_vm0, %v249_v50, 0.0 }
  0x5f   : > { %v256_v48 = vadd.f32 %v255_v47, %v254_v46  ;;  %v261_v59 = vsel %vm214_vm0, %v250_v54, 0.0  ;;  %v263_v63 = vsel %vm214_vm0, %v251_v58, 0.0  ;;  %v265_v2 = vsel %vm214_vm0, %v252_v62, 0.0 }
  0x60   : > { %v267_v4 = vsel %vm214_vm0, %v253_v1, 0.0 }
  0x61   : > { %v258_v52 = vadd.f32 %v257_v51, %v256_v48 }
  0x63   : > { %v260_v56 = vadd.f32 %v259_v55, %v258_v52 }
  0x65   : > { %v262_v60 = vadd.f32 %v261_v59, %v260_v56 }
  0x67   : > { %v264_v0 = vadd.f32 %v263_v63, %v262_v60 }
  0x69   : > { %v266_v3 = vadd.f32 %v265_v2, %v264_v0 }
  0x6b   : > { %v268_v5 = vadd.f32 %v267_v4, %v266_v3 }
  0x6d   : > { %v269_v6 = vrot.slane %v268_v5, 4 }
  0x6f   : > { %v270_v7 = vadd.f32 %v269_v6, %v268_v5 }
  0x71   : > { %v271_v8 = vrot.slane %v270_v7, 2 }
  0x73   : > { %v272_v9 = vadd.f32 %v271_v8, %v270_v7 }
  0x75   : > { %v273_v10 = vrot.slane %v272_v9, 1 }
  0x77   : > { %v274_v11 = vadd.f32 %v273_v10, %v272_v9 }
  0x79   : > { %v275_v12 = vmul.f32 0.015625, %v274_v11 }
  0x7b   : > { %v276_v13 = vadd.f32 1e-05, %v275_v12 }
  0x7d   : > { %576 = vrsqrt.f32 %v276_v13 }
  0x87   : > { %v577_v17 = vpop.eup %576 }
  0xbb   : > { %v303_v18 = vpop.permute.xlu1 %302  ;;  %v285_v19 = vpop.permute.xlu0 %284 }
  0xbc   : > { %v290_v20 = vrot.slane %v285_v19, %v289_v16  ;;  %v308_v21 = vrot.slane %v303_v18, %v289_v16 }
  0xbe   : > { %v318_v22 = vmul.f32 %v577_v17, %v290_v20  ;;  %v320_v27 = vmul.f32 %v577_v17, %v308_v21 }
  0xbf   : > { %v312_v23 = vpop.permute.xlu1 %311  ;;  %v294_v24 = vpop.permute.xlu0 %293 }
  0xc0   : > { %v317_v25 = vrot.slane %v312_v23, %v289_v16  ;;  %v299_v26 = vrot.slane %v294_v24, %v289_v16  ;;  %v322_v30 = vmul.f32 %v318_v22, %v238_v39  ;;  %v323_v31 = vmul.f32 %v318_v22, %v239_v40 }
  0xc1   : > { %v326_v38 = vmul.f32 %v320_v27, %v242_v49  ;;  %v327_v42 = vmul.f32 %v320_v27, %v243_v53 }
  0xc2   : > { %v321_v28 = vmul.f32 %v577_v17, %v317_v25  ;;  %v319_v29 = vmul.f32 %v577_v17, %v299_v26 }
  0xc3   : > { %v360_v32 = vpop.permute.xlu1 %359  ;;  %v356_v33 = vpop.permute.xlu0 %355 }
  0xc4   : > { %v324_v34 = vmul.f32 %v319_v29, %v240_v41  ;;  %v325_v35 = vmul.f32 %v319_v29, %v241_v44  ;;  %v370_v36 = vadd.f32 %v356_v33, %v322_v30  ;;  %v371_v37 = vadd.f32 %v356_v33, %v323_v31 }
  0xc5   : > { %v328_v39 = vmul.f32 %v321_v28, %v244_v57  ;;  %v329_v40 = vmul.f32 %v321_v28, %v245_v61 }
  0xc6   : > { %v372_v43 = vadd.f32 %v360_v32, %v324_v34  ;;  %v373_v45 = vadd.f32 %v360_v32, %v325_v35  ;;  %378 = vst.msk [vmem:[%s205_s9] sm:$0xff] %vm214_vm0, %v370_v36  ;;  %379 = vst.msk [vmem:[%s205_s9 + $0x8] sm:$0xff] %vm214_vm0, %v371_v37 }
  0xc7   : > { %v368_v46 = vpop.permute.xlu1 %367  ;;  %v364_v41 = vpop.permute.xlu0 %363 }
  0xc8   : > { %380 = vst.msk [vmem:[%s205_s9 + $0x10] sm:$0xff] %vm214_vm0, %v372_v43  ;;  %381 = vst.msk [vmem:[%s205_s9 + $0x18] sm:$0xff] %vm214_vm0, %v373_v45  ;;  %v376_v44 = vadd.f32 %v368_v46, %v328_v39  ;;  %v377_v47 = vadd.f32 %v368_v46, %v329_v40  ;;  %v374_v48 = vadd.f32 %v364_v41, %v326_v38 }
  0xc9   : > { %v375_v49 = vadd.f32 %v364_v41, %v327_v42 }
  0xca   : > { %384 = vst.msk [vmem:[%s205_s9 + $0x30] sm:$0xff] %vm214_vm0, %v376_v44  ;;  %385 = vst.msk [vmem:[%s205_s9 + $0x38] sm:$0xff] %vm214_vm0, %v377_v47 }
  0xcb   : > { %382 = vst.msk [vmem:[%s205_s9 + $0x20] sm:$0xff] %vm214_vm0, %v374_v48  ;;  %383 = vst.msk [vmem:[%s205_s9 + $0x28] sm:$0xff] %vm214_vm0, %v375_v49 }
  0xcc   : > { %621 = shalt.err (!%p618_p5)
}
  0xcd   : > { %s622_s4 = scalar_lea.hbm %s899_s15, 1024  ;;  %s626_s19 = scalar_lea.hbm %s959_s3, 2048 }
  0xce   : > { %p623_p4 = scmp.ne.s32.totalorder %s899_s15, %s622_s4  ;;  %p627_p12 = scmp.lt.u32.totalorder %s899_s15, %s959_s3 }
  0xcf   : > { %p628_p1 = scmp.lt.u32.totalorder %s626_s19, %s622_s4  ;;  %p630_p8 = scmp.lt.u32.totalorder %s622_s4, %s899_s15 }
  0xd0   : > { %p624_p7 = pnand %p623_p4, %p967_p9 }
  0xd1   : > { %p629_p3 = por %p628_p1, %p627_p12 }
  0xd2   : > { %p625_p10 = pneg %p624_p7 }
  0xd3   : > { %p631_p11 = por %p630_p8, %p629_p3 }
  0xd5   : > { %p632_p0 = pnand %p631_p11, %p625_p10 }
  0xd7   : > { %635 = shalt.err (!%p632_p0)
}
  0xd8   : > { %s697_s21 = smov 128   ;;  %s698_s9 = smov 8  }
  0xd9   : > { %509 = dma.vmem_to_hbm [thread:$0]  (%p967_p9), %s901_s10, 1024, %s899_s15, %s387_s18, %s697_s21, %s697_s21, %s698_s9  }
  0xda PF: > { %s416_s24 = sand.u32 1, %s670_s12   ;;  %p968_p6 = scmp.ne.s32.totalorder %s964_s27, 0 }
  0xdb   : > { %p969_p13 = scmp.ge.s32.totalorder %s690_s17, 2  ;;  %s417_s22 = scalar_lea.sflag [#allocation4], %s416_s24 }
  0xdd   : > { %p516_p2 = pnand %p969_p13, %p968_p6 }
  0xdf   : > { %665 = dma.done.wait (!%p516_p2), %s417_s22, 1024  }
  0xe0   : > { %667 = vsyncadd (!%p516_p2), %s417_s22, 4294966272  ;;  %s19_s17 = sadd.s32 1, %s690_s17   ;;  %s970_s12 = smov %s674_s13 }
  0xe1   : > { %p16_p5 = scmp.ge.s32.totalorder %s19_s17, 4   ;;  %s971_s13 = smov %s678_s14 }
  0xe2   : > { %s972_s14 = smov %s775_s26  ;;  %s973_s15 = smov %s686_s16 }
  0xe3   : > { %s974_s16 = smov %s976_s20  ;;  %18 = sbr.rel (!%p16_p5) target bundleno = 6 (0x6), region = 77 }
  0xea   :  { %422 = vsyncpa [#allocation3], 1 }
  0xeb   :  { %424 = vsyncpa [#allocation3 + $0x1], 1 }
  0xec   :  { %425 = vsyncpa [#allocation4], 1 }
  0xed   :  { %427 = vsyncpa [#allocation4 + $0x1], 1 }

</bundles_post_ra>
